<compile_context>
chip_gen: v6e
topology: v6e:2x2x1
jax: 0.10.0
libtpu: 0.0.40
codegen_flags: <defaults>
</compile_context>

<pallas_src>
import functools

import jax
import jax.numpy as jnp
import numpy as np
from jax.experimental import pallas as pl
from jax.experimental.pallas import tpu as pltpu


def _round_up(x, m):
    return (x + m - 1) // m * m


def _physical_vmem_bytes():
    # Best-effort trace-time hardware query; conservative (v7x-sized) fallback.
    try:
        return int(pltpu.get_tpu_info().vmem_capacity_bytes)
    except Exception:
        return 64 * 1024 * 1024


def _sine_layer_kernel(x_ref, w_ref, b_ref, o_ref, *, epilogue_dtype):
    # MXU matmul in the weight dtype (bf16 hidden layers, f32 "precise" layers)
    # with an f32 accumulator.  Bias add + sin + cast in `epilogue_dtype`.
    x = x_ref[...].astype(w_ref.dtype)                         # [TB, K]
    prec = jax.lax.Precision.HIGHEST if w_ref.dtype == jnp.float32 else None
    z = jnp.dot(x, w_ref[...],                                 # w_ref: [K, N_pad]
                preferred_element_type=jnp.float32,
                precision=prec)                                # [TB, N_pad] f32
    z = z.astype(epilogue_dtype) + b_ref[...].astype(epilogue_dtype)
    o_ref[...] = jnp.sin(z).astype(o_ref.dtype)


def prepare_sine_layer_params(w, b, omega_0=30.0, *, precise=False):
    """One-time (parameter-load) prep: fold omega_0 into W and b, zero-pad the
    lane (out_features) dim to a multiple of 128, and cast W to bf16 unless
    `precise=True` (full-f32 matmul path for large-|z| layers)."""
    K, N = w.shape
    n_pad = _round_up(N, 128)
    w_dtype = jnp.float32 if precise else jnp.bfloat16
    w_p = (jnp.zeros((K, n_pad), jnp.float32)
           .at[:, :N].set(w * omega_0)
           .astype(w_dtype))                                   # [K, N_pad]
    b_p = (jnp.zeros((1, n_pad), jnp.float32)
           .at[:, :N].set(b * omega_0))                        # [1, N_pad] f32
    return w_p, b_p, N


def sine_layer_forward(x, w_p, b_p, n_out, *, block_b=1024, min_grid_steps=4,
                       out_dtype=None, bf16_epilogue=False,
                       vmem_budget_bytes=None, buffer_count=None):
    """y = sin(x @ w_p + b_p)[:, :n_out]  with w_p/b_p from prepare_sine_layer_params.

    x       : [B, in_features]  (f32 or bf16 — no wrapper-side cast is added)
    w_p     : [in_features, N_pad]  bf16 or f32 (omega_0 folded, lane-padded)
    b_p     : [1, N_pad] f32        (omega_0 folded, lane-padded)
    out_dtype : output dtype (defaults to x.dtype); bf16 halves write traffic.
    bf16_epilogue : do bias+sin+cast in bf16 (v6e/v7x VPU relief; keep False on v5e).
    """
    B, K = x.shape
    K2, n_pad = w_p.shape
    assert K == K2 and n_pad % 128 == 0
    out_dtype = jnp.dtype(out_dtype if out_dtype is not None else x.dtype)

    x_bytes = jnp.dtype(x.dtype).itemsize
    w_bytes = jnp.dtype(w_p.dtype).itemsize
    o_bytes = out_dtype.itemsize
    nbuf = 2 if buffer_count is None else buffer_count

    # ---- VMEM-footprint-driven batch tile size ----------------------------
    phys_vmem = _physical_vmem_bytes()
    budget = (vmem_budget_bytes if vmem_budget_bytes is not None
              else min(32 << 20, phys_vmem // 2))
    fixed = 2 * (K * n_pad * w_bytes + n_pad * 4)          # weight + bias buffers
    per_row = (nbuf * K * x_bytes                          # x DMA buffers
               + nbuf * n_pad * o_bytes                    # out DMA buffers
               + K * max(w_bytes, x_bytes)                 # in-kernel x cast copy
               + n_pad * 4                                 # f32 accumulator z
               + n_pad * o_bytes)                          # sin result before store
    avail = max(budget - fixed, 8 * per_row)
    tb = max(8, min(block_b, (avail // per_row) // 8 * 8))
    if min_grid_steps and min_grid_steps > 1:              # keep both v7x TCs fed
        tb = min(tb, max(8, _round_up(pl.cdiv(B, min_grid_steps), 8)))
    tb = min(tb, _round_up(B, 8))
    grid = (pl.cdiv(B, tb),)

    footprint = fixed + tb * per_row
    vmem_limit = int(min(48 << 20, max(32 << 20, footprint * 5 // 4)))

    # Optional deeper pipelining on the moving (batch-tiled) blocks only.
    moving = ({} if buffer_count is None
              else {"pipeline_mode": pl.Buffered(buffer_count)})

    epilogue_dtype = (jnp.bfloat16
                      if (bf16_epilogue and out_dtype == jnp.bfloat16)
                      else jnp.float32)
    kernel = functools.partial(_sine_layer_kernel, epilogue_dtype=epilogue_dtype)

    out = pl.pallas_call(
        kernel,
        out_shape=jax.ShapeDtypeStruct((B, n_pad), out_dtype),
        grid=grid,
        in_specs=[
            pl.BlockSpec((tb, K), lambda i: (i, 0), **moving),   # x marches over batch
            pl.BlockSpec((K, n_pad), lambda i: (0, 0)),          # weight: VMEM-resident
            pl.BlockSpec((1, n_pad), lambda i: (0, 0)),          # bias:   VMEM-resident
        ],
        out_specs=pl.BlockSpec((tb, n_pad), lambda i: (i, 0), **moving),
        compiler_params=pltpu.CompilerParams(
            dimension_semantics=("parallel",),                   # megacore on v7x
            vmem_limit_bytes=vmem_limit,
        ),
        cost_estimate=pl.CostEstimate(
            flops=2 * B * K * n_pad,
            transcendentals=B * n_pad,
            bytes_accessed=(x_bytes * B * K          # x read
                            + w_bytes * K * n_pad    # weight read
                            + 4 * n_pad              # bias read
                            + o_bytes * B * n_pad),  # output write
        ),
    )(x, w_p, b_p)

    # Avoid the extra slice copy when out_features is already lane-aligned.
    return out if n_out == n_pad else out[:, :n_out]


def init_sine_layer_params(key, in_features, out_features, is_first=False, omega_0=30.0):
    """Deterministic SIREN init matching SineLayer.init_weights + nn.Linear bias init."""
    kw, kb = jax.random.split(key)
    if is_first:
        bound_w = 1.0 / in_features
    else:
        bound_w = np.sqrt(6.0 / in_features) / omega_0
    # Weight stored as [in, out] (transpose of torch's [out, in]) for the kernel.
    w = jax.random.uniform(kw, (in_features, out_features), jnp.float32,
                           minval=-bound_w, maxval=bound_w)
    bound_b = 1.0 / np.sqrt(in_features)      # nn.Linear default bias init
    b = jax.random.uniform(kb, (out_features,), jnp.float32,
                           minval=-bound_b, maxval=bound_b)
    return w, b


if __name__ == "__main__":
    key = jax.random.PRNGKey(0)
    k_x, k_a, k_b = jax.random.split(key, 3)

    batch = 60            # deliberately NOT a multiple of the batch tile (partial block path)
    omega_0 = 30.0

    # --- Layer A: first SIREN layer (tiny K, |z| up to ~omega_0) -> precise f32 path
    in_a, out_a = 16, 128                     # out_features multiple of 128: no lane padding
    x = jax.random.uniform(k_x, (batch, in_a), jnp.float32, minval=-1.0, maxval=1.0)
    w_a, b_a = init_sine_layer_params(k_a, in_a, out_a, is_first=True, omega_0=omega_0)
    wp_a, bp_a, na = prepare_sine_layer_params(w_a, b_a, omega_0, precise=True)
    y_a = jax.block_until_ready(sine_layer_forward(x, wp_a, bp_a, na))
    assert y_a.shape == (batch, out_a)
    ref_a = jnp.sin(omega_0 * (jnp.dot(x, w_a, precision=jax.lax.Precision.HIGHEST) + b_a))
    np.testing.assert_allclose(np.asarray(y_a), np.asarray(ref_a), rtol=1e-4, atol=1e-4)

    # --- Layer B: hidden SIREN layer (bf16 weights, padded out_features) ---
    in_b, out_b = 128, 32
    w_b, b_b = init_sine_layer_params(k_b, in_b, out_b, is_first=False, omega_0=omega_0)
    wp_b, bp_b, nb = prepare_sine_layer_params(w_b, b_b, omega_0)      # bf16 weights
    x_b = y_a                                                          # chain the layers
    y_b = jax.block_until_ready(sine_layer_forward(x_b, wp_b, bp_b, nb))
    assert y_b.shape == (batch, out_b)
    # Reference matched to the kernel precision path (bf16 operands, f32 accumulate).
    x_rb = x_b.astype(jnp.bfloat16).astype(jnp.float32)
    w_rb = (w_b * omega_0).astype(jnp.bfloat16).astype(jnp.float32)
    ref_b = jnp.sin(jnp.dot(x_rb, w_rb, precision=jax.lax.Precision.HIGHEST) + omega_0 * b_b)
    np.testing.assert_allclose(np.asarray(y_b), np.asarray(ref_b), rtol=2e-3, atol=2e-3)
    # Loose check vs the pure-f32 PyTorch-equivalent reference.
    ref_b_f32 = jnp.sin(omega_0 * (x_b @ w_b + b_b))
    np.testing.assert_allclose(np.asarray(y_b), np.asarray(ref_b_f32), rtol=5e-2, atol=5e-2)

    # --- Layer B with bf16 input and bf16 output (half the I/O traffic) ----
    x_b16 = x_b.astype(jnp.bfloat16)          # test-only cast; real producer writes bf16
    y_b16 = jax.block_until_ready(
        sine_layer_forward(x_b16, wp_b, bp_b, nb, out_dtype=jnp.bfloat16))
    assert y_b16.dtype == jnp.bfloat16 and y_b16.shape == (batch, out_b)
    np.testing.assert_allclose(np.asarray(y_b16.astype(jnp.float32)),
                               np.asarray(ref_b_f32), rtol=5e-2, atol=5e-2)

    print("KERNEL_OK")
</pallas_src>

<mosaic_0001>
module attributes {stable_mosaic.version = 11 : i64} {
  func.func @_sine_layer_kernel(%arg0: i32, %arg1: memref<16x16xf32, #tpu.memory_space<vmem>>, %arg2: memref<16x128xf32, #tpu.memory_space<vmem>>, %arg3: memref<1x128xf32, #tpu.memory_space<vmem>>, %arg4: memref<16x128xf32, #tpu.memory_space<vmem>>) attributes {dimension_semantics = [#tpu.dimension_semantics<parallel>], iteration_bounds = array<i64: 4>, scalar_prefetch = 0 : i64, scratch_operands = 0 : i64, tpu.core_type = #tpu.core_type<tc>, window_params = [{transform_indices = @transform_0, window_bounds = array<i64: 16, 16>}, {pipeline_mode = #tpu.pipeline_mode<synchronous>, transform_indices = @transform_1, window_bounds = array<i64: 16, 128>}, {pipeline_mode = #tpu.pipeline_mode<synchronous>, transform_indices = @transform_2, window_bounds = array<i64: 1, 128>}, {transform_indices = @transform_3, window_bounds = array<i64: 16, 128>}]} {
    %c0 = arith.constant 0 : index
    %c0_0 = arith.constant 0 : index
    %0 = vector.load %arg1[%c0, %c0_0] : memref<16x16xf32, #tpu.memory_space<vmem>>, vector<16x16xf32>
    %c0_1 = arith.constant 0 : index
    %c0_2 = arith.constant 0 : index
    %1 = vector.load %arg2[%c0_1, %c0_2] : memref<16x128xf32, #tpu.memory_space<vmem>>, vector<16x128xf32>
    %cst = arith.constant dense<0.000000e+00> : vector<16x128xf32>
    %2 = tpu.matmul %0, %1, %cst {dimension_numbers = #tpu.dot_dimension_numbers<[1], [0], [0], [1], [0, 0, 1, 1], [], []>, precision = #tpu.contract_precision<fp32>} : vector<16x16xf32>, vector<16x128xf32>, vector<16x128xf32> -> vector<16x128xf32>
    %c0_3 = arith.constant 0 : index
    %c0_4 = arith.constant 0 : index
    %3 = vector.load %arg3[%c0_3, %c0_4] : memref<1x128xf32, #tpu.memory_space<vmem>>, vector<1x128xf32>
    %4 = vector.broadcast %3 : vector<1x128xf32> to vector<16x128xf32>
    %5 = arith.addf %2, %4 : vector<16x128xf32>
    %6 = math.sin %5 : vector<16x128xf32>
    %c0_5 = arith.constant 0 : index
    %c0_6 = arith.constant 0 : index
    %7 = vector.load %arg4[%c0_5, %c0_6] : memref<16x128xf32, #tpu.memory_space<vmem>>, vector<16x128xf32>
    tpu.vector_store %arg4[%c0_5, %c0_6], %6 {strides = array<i32>} : memref<16x128xf32, #tpu.memory_space<vmem>>, vector<16x128xf32>,
    return
  }
  func.func @transform_0(%arg0: i32) -> (i32, i32) {
    %c0_i32 = arith.constant 0 : i32
    %c0_i32_0 = arith.constant 0 : i32
    return %arg0, %c0_i32 : i32, i32
  }
  func.func @transform_1(%arg0: i32) -> (i32, i32) {
    %c0_i32 = arith.constant 0 : i32
    %c0_i32_0 = arith.constant 0 : i32
    %c0_i32_1 = arith.constant 0 : i32
    return %c0_i32, %c0_i32_0 : i32, i32
  }
  func.func @transform_2(%arg0: i32) -> (i32, i32) {
    %c0_i32 = arith.constant 0 : i32
    %c0_i32_0 = arith.constant 0 : i32
    %c0_i32_1 = arith.constant 0 : i32
    return %c0_i32, %c0_i32_0 : i32, i32
  }
  func.func @transform_3(%arg0: i32) -> (i32, i32) {
    %c0_i32 = arith.constant 0 : i32
    %c0_i32_0 = arith.constant 0 : i32
    return %arg0, %c0_i32 : i32, i32
  }
}

</mosaic_0001>

<bundles_post_ra>
// kernel: tpu_custom_call.1
= control target key start
LH: loop header
LB: loop body
LE: loop exit
PB: predicated region body
PF: predicated region fallthrough
CT: control target
= control target key end

     0   :  { %8 = vsyncpa [#allocation3], 0  ;;  %s1403_s0 = inlined_call_operand.vmem [shape: f32[60,16], index: 0, kind: input, shape index: {}]   ;;  %s1404_s1 = inlined_call_operand.vmem [shape: f32[16,128], index: 1, kind: input, shape index: {}]   ;;  %s1405_s2 = inlined_call_operand.vmem [shape: f32[1,128], index: 2, kind: input, shape index: {}]   ;;  %s1406_s3 = inlined_call_operand.hbm [shape: f32[60,128], index: 3, kind: output, shape index: {}]  }
   0x1   :  { %10 = vsyncpa [#allocation3 + $0x1], 0  ;;  %s1220_s12 = smov 0   ;;  %s1222_s13 = smov 0  }
   0x2   :  { %s1224_s14 = smov 0   ;;  %s1226_s15 = smov 0  }
   0x3 LB: > { %s1241_s16 = sadd.s32 4294967295, %s1189_s15   ;;  %s978_s17 = sadd.s32 4294967294, %s1189_s15   ;;  %s1189_s15 = sphi %s1226_s15, %s1414_s15   ;;  %s1185_s14 = sphi %s1224_s14, %s1413_s14   ;;  %s1181_s13 = sphi %s1222_s13, %s1412_s13   ;;  %s1177_s12 = sphi %s1220_s12, %s1411_s12  }
   0x4   : > { %s1245_s18 = sadd.s32 1, %s1189_s15   ;;  %s91_s19 = sadd.s32 1, %s1185_s14 }
   0x5   : > { %s88_s20 = ssub.s32 %s1189_s15, %s1245_s18  ;;  %p101_p0 = scmp.ne.s32.totalorder %s1185_s14, %s1181_s13 }
   0x6   : > { %p89_p1 = scmp.eq.s32.totalorder %s88_s20, 0  ;;  %p102_p2 = scmp.eq.s32.totalorder %s1241_s16, 3 }
   0x7   : > { %p107_p3 = scmp.ne.s32.totalorder %s1181_s13, %s1177_s12  ;;  %p108_p4 = scmp.eq.s32.totalorder %s978_s17, 3 }
   0x8   : > { %s1256_s21 = scalar_select %p89_p1, %s1185_s14, %s91_s19  }
   0x9   : > { %p1258_p5 = por %p102_p2, %p101_p0  ;;  %p1262_p6 = por %p108_p4, %p107_p3 }
   0xa   : > { %p981_p7 = scmp.ge.s32.totalorder %s1189_s15, 1  ;;  %p141_p8 = scmp.lt.s32.totalorder %s1189_s15, 5 }
   0xc   : > { %p142_p9 = pnand %p981_p7, %p141_p8 }
   0xd   : > { %s983_s28 = sshll.u32 (!%p142_p9), %s1241_s16, 1  ;;  %s162_s8 = sand.u32 (!%p142_p9), 1, %s1181_s13  }
   0xe   : > { %145 = sbr.rel (%p142_p9) target bundleno = 349 (0x15d), region = 32  ;;  %p166_p10 = scmp.lt.s32.totalorder (!%p142_p9), %s983_s28, 7 }
   0xf   : > { %s982_s9 = sshll.u32 (!%p142_p9), %s162_s8, 4  ;;  %s999_s11 = sshll.u32 (!%p142_p9), %s1241_s16, 8 }
  0x10   : > { %s164_s10 = scalar_lea.vmem (!%p142_p9), [#allocation2], %s982_s9  ;;  %s1356_s24 = scalar_lea.hbm (!%p142_p9), %s1406_s3, %s999_s11 }
  0x11   : > { %s916_s17 = sshll.u32 (!%p142_p9), %s164_s10, 4  ;;  %s1363_s16 = scalar_lea.sflag (!%p142_p9), [#allocation3], %s162_s8  ;;  %s1358_s17 = int_to_ptr.vmem [resolvable:$true] %s916_s17 }
  0x12   : > { %s1129_s25 = scalar_lea.vmem (!%p142_p9), %s1358_s17, 256  ;;  %s1197_s26 = smov (!%p142_p9), [#allocation2]  }
  0x13   : > { %v175_v0 = vld [vmem:[%s1404_s1 + $0x8] sm:$0xff]  ;;  %v174_v1 = vld [vmem:[%s1404_s1] sm:$0xff]  ;;  %s1416_s28 = smov (!%p166_p10, %s983_s28), 7  ;;  %vm183_vm0 = vcmask 130048   ;;  %p1130_p11 = scmp.ne.s32.totalorder %s1358_s17, %s1129_s25 }
  0x14   : > { %v219_v2 = vand.u32 4294901760, %v175_v0  ;;  %v222_v3 = vand.u32 4294901760, %v174_v1  ;;  %s984_s29 = sshll.u32 %s1416_s28, 3  ;;  %v985_v28 = vld [vmem:[%s1405_s2] ss:$0 sm:$0xff]  ;;  %s1133_s27 = sshll.u32 %s1197_s26, 4  ;;  %s1134_s27 = int_to_ptr.vmem [resolvable:$false] %s1133_s27 }
  0x15   : > { %s169_s5 = scalar_lea.vmem %s1403_s0, %s984_s29  ;;  %p1131_p12 = pnand %p1130_p11, %p1258_p5 }
  0x16   : > { %1024 = vmatprep.subr.mxu0 %v219_v2  ;;  %v307_v4 = vsub.f32 %v175_v0, %v219_v2  ;;  %v314_v5 = vsub.f32 %v174_v1, %v222_v3  ;;  %v172_v10 = vld [vmem:[%s169_s5] sm:$0xff]  ;;  %v173_v11 = vld [vmem:[%s169_s5 + $0x8] sm:$0xff]  ;;  %s1135_s28 = scalar_lea.vmem %s1134_s27, 512  ;;  %p1136_p0 = scmp.lt.s32.totalorder %s1358_s17, %s1134_s27 }
  0x17   : > { %1025 = vmatpush3.msra.mxu0 %v219_v2  ;;  %v185_v12 = vsel %vm183_vm0, %v172_v10, 0  ;;  %v188_v13 = vsel %vm183_vm0, %v173_v11, 0  ;;  %v1193_v10 = vmov 2131351028   ;;  %p1132_p13 = pneg %p1131_p12  ;;  %p1137_p1 = scmp.lt.s32.totalorder %s1135_s28, %s1129_s25 }
  0x18   : > { %v308_v6 = vand.u32 4294901760, %v307_v4  ;;  %1026 = vmatprep.subr.mxu0 %v222_v3  ;;  %v315_v7 = vand.u32 4294901760, %v314_v5  ;;  %v257_v16 = vand.u32 4294901760, %v185_v12  ;;  %v267_v17 = vand.u32 4294901760, %v188_v13 }
  0x19   : > { %1027 = vmatpush3.msra.mxu0 %v222_v3  ;;  %p1138_p2 = por %p1137_p1, %p1136_p0 }
  0x1a   : > { %v309_v8 = vsub.f32 %v307_v4, %v308_v6  ;;  %v316_v9 = vsub.f32 %v314_v5, %v315_v7  ;;  %1038 = vmatprep.subr.mxu0 %v307_v4  ;;  %v258_v18 = vsub.f32 %v185_v12, %v257_v16  ;;  %1035 = vmatprep.mubr.f32.mxu1 %v257_v16  ;;  %v1194_v12 = vmov 2102212464  }
  0x1b   : > { %v268_v19 = vsub.f32 %v188_v13, %v267_v17  ;;  %p1139_p3 = pnand %p1138_p2, %p1132_p13 }
  0x1c   : > { %v310_v14 = vand.u32 4294901760, %v309_v8  ;;  %v317_v15 = vand.u32 4294901760, %v316_v9  ;;  %v259_v20 = vand.u32 4294901760, %v258_v18  ;;  %v1192_v8 = vmov 2475754826  }
  0x1d   : > { %v269_v21 = vand.u32 4294901760, %v268_v19 }
  0x1e   : > { %1031 = vmatprep.subr.mxu1 %v310_v14  ;;  %v260_v22 = vsub.f32 %v258_v18, %v259_v20 }
  0x1f   : > { %1032 = vmatpush3.msra.mxu1 %v310_v14  ;;  %v270_v23 = vsub.f32 %v268_v19, %v269_v21  ;;  %v1195_v14 = vmov 920167782  }
  0x20   : > { %1033 = vmatprep.subr.mxu1 %v317_v15  ;;  %v261_v24 = vand.u32 4294901760, %v260_v22 }
  0x21   : > { %1034 = vmatpush3.msra.mxu1 %v317_v15  ;;  %v271_v25 = vand.u32 4294901760, %v270_v23 }
  0x22   : > { %1036 = vmatmul.mubr.f32.vlgmr.msra.gmra.mxu1 %v267_v17  ;;  %1045 = vmatprep.subr.mxu1 %v219_v2 }
  0x23   : > { %1046 = vmatpush3.msra.mxu1 %v219_v2  ;;  %1049 = vmatprep.mubr.f32.mxu1 %v259_v20 }
  0x24   : > { %1047 = vmatprep.subr.mxu1 %v222_v3  ;;  %1028 = vmatprep.mubr.f32.mxu0 %v261_v24 }
  0x25   : > { %1048 = vmatpush3.msra.mxu1 %v222_v3  ;;  %1029 = vmatmul.mubr.f32.vlgmr.msra.gmra.mxu0 %v271_v25 }
  0x26   : > { %1050 = vmatmul.mubr.f32.vlgmr.msra.gmra.mxu1 %v269_v21  ;;  %1059 = vmatprep.subr.mxu1 %v219_v2  ;;  %v1196_v21 = vmov 1326507024  }
  0x27   : > { %1039 = vmatpush3.msra.mxu0 %v307_v4  ;;  %1042 = vmatprep.mubr.f32.mxu0 %v258_v18 }
  0x28   : > { %1040 = vmatprep.subr.mxu0 %v314_v5  ;;  %1060 = vmatpush3.msra.mxu1 %v219_v2 }
  0x29   : > { %1041 = vmatpush3.msra.mxu0 %v314_v5  ;;  %1061 = vmatprep.subr.mxu1 %v222_v3  ;;  %v1191_v5 = vmov 683565275  }
  0x2a   : > { %1052 = vmatprep.subr.mxu0 %v308_v6  ;;  %1043 = vmatmul.mubr.f32.vlgmr.msra.gmra.mxu0 %v268_v19 }
  0x2b   : > { %1053 = vmatpush3.msra.mxu0 %v308_v6  ;;  %1056 = vmatprep.mubr.f32.mxu0 %v257_v16 }
  0x2c   : > { %1054 = vmatprep.subr.mxu0 %v315_v7  ;;  %1062 = vmatpush3.msra.mxu1 %v222_v3 }
  0x2d   : > { %1055 = vmatpush3.msra.mxu0 %v315_v7  ;;  %1063 = vmatprep.mubr.f32.mxu1 %v257_v16 }
  0x2e   : > { %1057 = vmatmul.mubr.f32.vlgmr.msra.gmra.mxu0 %v267_v17  ;;  %1064 = vmatmul.mubr.f32.vlgmr.msra.gmra.mxu1 %v267_v17 }
  0xe2   : > { %v1037_v26 = vpop.f32.mrf.mxu1 }
  0xe4   : > { %v354_v27 = vpop.f32.mrf.mxu1 }
  0xe5   : > { %v1030_v29 = vpop.f32.mrf.mxu0 }
  0xe6   : > { %v274_v30 = vadd.f32 %v1030_v29, %v985_v28  ;;  %v1051_v31 = vpop.f32.mrf.mxu1 }
  0xe7   : > { %v263_v32 = vpop.f32.mrf.mxu0 }
  0xe8   : > { %v361_v33 = vadd.f32 %v1037_v26, %v274_v30  ;;  %v264_v34 = vadd.f32 %v985_v28, %v263_v32  ;;  %v518_v38 = vpop.f32.mrf.mxu1 }
  0xea   : > { %v1044_v35 = vpop.f32.mrf.mxu0  ;;  %v355_v36 = vadd.f32 %v354_v27, %v264_v34 }
  0xeb   : > { %v444_v37 = vadd.f32 %v1044_v35, %v361_v33 }
  0xec   : > { %v436_v39 = vpop.f32.mrf.mxu0 }
  0xed   : > { %v527_v40 = vadd.f32 %v1051_v31, %v444_v37  ;;  %v437_v41 = vadd.f32 %v436_v39, %v355_v36 }
  0xee   : > { %v1058_v42 = vpop.f32.mrf.mxu0  ;;  %v1065_v45 = vpop.f32.mrf.mxu1 }
  0xef   : > { %v519_v43 = vadd.f32 %v518_v38, %v437_v41  ;;  %v610_v44 = vadd.f32 %v1058_v42, %v527_v40 }
  0xf0   : > { %v603_v46 = vpop.f32.mrf.mxu0  ;;  %v682_v51 = vpop.f32.mrf.mxu1 }
  0xf1   : > { %v1281_v47 = vadd.f32 %v1065_v45, %v610_v44  ;;  %v604_v48 = vadd.f32 %v603_v46, %v519_v43 }
  0xf3   : > { %v796_v49 = vand.u32 2147483647, %v1281_v47  ;;  %v799_v50 = vand.u32 2139095040, %v1281_v47  ;;  %v1285_v52 = vadd.f32 %v682_v51, %v604_v48  ;;  %vm798_vm15 = vcmp.lt.s32.totalorder %v1281_v47, 0 }
  0xf5   : > { %v800_v53 = vshrl.u32 %v799_v50, 23  ;;  %v803_v54 = vand.u32 8388607, %v796_v49  ;;  %v695_v55 = vand.u32 2139095040, %v1285_v52  ;;  %v692_v57 = vand.u32 2147483647, %v1285_v52 }
  0xf6   : > { %vm797_vm0 = vcmp.le.f32.partialorder %v796_v49, 0.7853982 }
  0xf7   : > { %v990_v56 = vadd.s32 4294967169, %v800_v53  ;;  %v696_v58 = vshrl.u32 %v695_v55, 23  ;;  %v804_v60 = vor.u32 8388608, %v803_v54  ;;  %v699_v62 = vand.u32 8388607, %v692_v57 }
  0xf9   : > { %v806_v59 = vadd.s32 1, %v990_v56  ;;  %v986_v61 = vadd.s32 4294967169, %v696_v58  ;;  %v1293_v3 = vshll.u32 %v804_v60, 8  ;;  %v700_v7 = vor.u32 8388608, %v699_v62 }
  0xfb   : > { %vm807_vm1 = vcmp.gt.s32.totalorder %v806_v59, 0  ;;  %v702_v0 = vadd.s32 1, %v986_v61  ;;  %v740_v40 = vshll.u32 %v700_v7, 8 }
  0xfc   : > { %v808_v63 = vsel %vm807_vm1, %v806_v59, 0  ;;  %vm694_vm1 = vcmp.lt.s32.totalorder %v1285_v52, 0 }
  0xfd   : > { %v809_v1 = vshrl.u32 %v808_v63, 5  ;;  %v810_v2 = vand.u32 31, %v808_v63  ;;  %vm703_vm2 = vcmp.gt.s32.totalorder %v702_v0, 0 }
  0xfe   : > { %v704_v26 = vsel %vm703_vm2, %v702_v0, 0  ;;  %vm1339_vm2 = vcmp.le.f32.partialorder %v692_v57, 0.7853982 }
  0xff   : > { %v811_v4 = vsub.s32 32, %v810_v2  ;;  %v813_v6 = vshll.u32 %v1191_v5, %v810_v2  ;;  %v816_v9 = vshll.u32 %v1192_v8, %v810_v2  ;;  %v819_v11 = vshll.u32 %v1193_v10, %v810_v2 }
 0x100   : > { %v822_v13 = vshll.u32 %v1194_v12, %v810_v2  ;;  %v825_v15 = vshll.u32 %v1195_v14, %v810_v2  ;;  %vm828_vm3 = vcmp.lt.s32.totalorder %v809_v1, 1  ;;  %vm830_vm4 = vcmp.lt.s32.totalorder %v809_v1, 3 }
 0x101   : > { %v814_v16 = vshrl.u32 %v1192_v8, %v811_v4  ;;  %v817_v17 = vshrl.u32 %v1193_v10, %v811_v4  ;;  %v820_v18 = vshrl.u32 %v1194_v12, %v811_v4  ;;  %v812_v19 = vshrl.u32 %v1191_v5, %v811_v4 }
 0x102   : > { %v823_v20 = vshrl.u32 %v1195_v14, %v811_v4  ;;  %v826_v22 = vshrl.u32 %v1196_v21, %v811_v4  ;;  %vm831_vm5 = vcmp.lt.s32.totalorder %v809_v1, 4  ;;  %v706_v29 = vand.u32 31, %v704_v26 }
 0x103   : > { %v815_v23 = vor.u32 %v814_v16, %v813_v6  ;;  %v818_v24 = vor.u32 %v817_v17, %v816_v9  ;;  %v821_v25 = vor.u32 %v820_v18, %v819_v11  ;;  %vm829_vm6 = vcmp.lt.s32.totalorder %v809_v1, 2 }
 0x104   : > { %v824_v27 = vor.u32 %v823_v20, %v822_v13  ;;  %v827_v28 = vor.u32 %v826_v22, %v825_v15  ;;  %v707_v37 = vsub.s32 32, %v706_v29  ;;  %v705_v44 = vshrl.u32 %v704_v26, 5 }
 0x105   : > { %v832_v30 = vsel %vm828_vm3, %v812_v19, %v815_v23  ;;  %v833_v31 = vsel %vm831_vm5, %v821_v25, 2102212464  ;;  %v836_v32 = vsel %vm828_vm3, %v815_v23, %v818_v24  ;;  %v840_v33 = vsel %vm828_vm3, %v818_v24, %v821_v25 }
 0x106   : > { %v834_v34 = vsel %vm830_vm4, %v818_v24, %v833_v31  ;;  %v837_v35 = vsel %vm831_vm5, %v824_v27, 920167782  ;;  %v841_v36 = vsel %vm831_vm5, %v827_v28, 1326507024  ;;  %v709_v51 = vshll.u32 %v1191_v5, %v706_v29 }
 0x107   : > { %v838_v38 = vsel %vm830_vm4, %v821_v25, %v837_v35  ;;  %v842_v39 = vsel %vm830_vm4, %v824_v27, %v841_v36  ;;  %v835_v41 = vsel %vm829_vm6, %v832_v30, %v834_v34  ;;  %v710_v53 = vshrl.u32 %v1192_v8, %v707_v37 }
 0x108   : > { %v839_v42 = vsel %vm829_vm6, %v836_v32, %v838_v38  ;;  %v843_v43 = vsel %vm829_vm6, %v840_v33, %v842_v39  ;;  %v712_v54 = vshll.u32 %v1192_v8, %v706_v29  ;;  %v713_v55 = vshrl.u32 %v1193_v10, %v707_v37 }
 0x109   : > { %v1305_v45 = vmul.u32.u64.low %v1293_v3, %v843_v43  ;;  %v1306_v46 = vmul.u32.u64.high %v1293_v3, %v843_v43, %v1305_v45  ;;  %v1309_v48 = vmul.u32.u64.low %v1293_v3, %v839_v42  ;;  %v1310_v50 = vmul.u32.u64.high %v1293_v3, %v839_v42, %v1309_v48 }
 0x10a   : > { %v715_v56 = vshll.u32 %v1193_v10, %v706_v29  ;;  %v716_v58 = vshrl.u32 %v1194_v12, %v707_v37  ;;  %v718_v59 = vshll.u32 %v1194_v12, %v706_v29  ;;  %v719_v60 = vshrl.u32 %v1195_v14, %v707_v37 }
 0x10b   : > { %v711_v61 = vor.u32 %v710_v53, %v709_v51  ;;  %v714_v62 = vor.u32 %v713_v55, %v712_v54  ;;  %v721_v63 = vshll.u32 %v1195_v14, %v706_v29  ;;  %v722_v0 = vshrl.u32 %v1196_v21, %v707_v37 }
 0x10c   : > { %v851_v1 = vmul.u32 %v1293_v3, %v835_v41  ;;  %vm853_vm7 = vc.u32 %v1306_v46, %v1309_v48  ;;  %v854_v2 = vadd.s32 1, %v1310_v50  ;;  %v717_v4 = vor.u32 %v716_v58, %v715_v56 }
 0x10d   : > { %v708_v6 = vshrl.u32 %v1191_v5, %v707_v37  ;;  %v720_v7 = vor.u32 %v719_v60, %v718_v59  ;;  %v723_v8 = vor.u32 %v722_v0, %v721_v63  ;;  %vm724_vm8 = vcmp.lt.s32.totalorder %v705_v44, 1 }
 0x10e   : > { %v855_v9 = vsel %vm853_vm7, %v854_v2, %v1310_v50  ;;  %vm726_vm9 = vcmp.lt.s32.totalorder %v705_v44, 3  ;;  %vm727_vm10 = vcmp.lt.s32.totalorder %v705_v44, 4  ;;  %v732_v10 = vsel %vm724_vm8, %v711_v61, %v714_v62 }
 0x10f   : > { %v856_v11 = vadd.s32 %v855_v9, %v851_v1  ;;  %v729_v12 = vsel %vm727_vm10, %v717_v4, 2102212464  ;;  %v733_v13 = vsel %vm727_vm10, %v720_v7, 920167782  ;;  %v736_v3 = vsel %vm724_vm8, %v714_v62, %v717_v4 }
 0x110   : > { %vm725_vm11 = vcmp.lt.s32.totalorder %v705_v44, 2  ;;  %v728_v14 = vsel %vm724_vm8, %v708_v6, %v711_v61  ;;  %v734_v15 = vsel %vm726_vm9, %v717_v4, %v733_v13  ;;  %v737_v16 = vsel %vm727_vm10, %v723_v8, 1326507024 }
 0x111   : > { %v857_v17 = vadd.s32 536870912, %v856_v11  ;;  %v730_v18 = vsel %vm726_vm9, %v714_v62, %v729_v12  ;;  %v735_v19 = vsel %vm725_vm11, %v732_v10, %v734_v15  ;;  %v738_v5 = vsel %vm726_vm9, %v720_v7, %v737_v16 }
 0x112   : > { %v739_v20 = vsel %vm725_vm11, %v736_v3, %v738_v5  ;;  %v1320_v21 = vmul.u32.u64.low %v740_v40, %v735_v19  ;;  %v1321_v22 = vmul.u32.u64.high %v740_v40, %v735_v19, %v1320_v21  ;;  %v731_v26 = vsel %vm725_vm11, %v728_v14, %v730_v18 }
 0x113   : > { %v858_v23 = vshrl.u32 %v857_v17, 30  ;;  %v1323_v24 = vmul.u32.u64.low %v740_v40, %v739_v20  ;;  %v1324_v25 = vmul.u32.u64.high %v740_v40, %v739_v20, %v1323_v24  ;;  %v747_v30 = vmul.u32 %v740_v40, %v731_v26 }
 0x114   : > { %v750_v28 = vadd.s32 1, %v1321_v22  ;;  %v852_v43 = vadd.s32 %v1309_v48, %v1306_v46  ;;  %vm888_vm6 = vweird.f32 %v1281_v47  ;;  %vm784_vm10 = vweird.f32 %v1285_v52 }
 0x115   : > { %v859_v27 = vshll.u32 %v858_v23, 30  ;;  %vm749_vm12 = vc.u32 %v1324_v25, %v1320_v21  ;;  %v748_v1 = vadd.s32 %v1320_v21, %v1324_v25  ;;  %v882_v8 = vsub.s32 4, %v858_v23 }
 0x116   : > { %v751_v31 = vsel %vm749_vm12, %v750_v28, %v1321_v22 }
 0x117   : > { %v860_v29 = vsub.s32 %v856_v11, %v859_v27  ;;  %v752_v33 = vadd.s32 %v751_v31, %v747_v30  ;;  %v883_v3 = vsel %vm798_vm15, %v882_v8, %v858_v23 }
 0x118   : > { %v885_v16 = vsel %vm797_vm0, 0, %v883_v3 }
 0x119   : > { %v862_v32 = vsub.s32 0, %v860_v29  ;;  %v753_v35 = vadd.s32 536870912, %v752_v33  ;;  %v889_v19 = vadd.s32 3, %v885_v16 }
 0x11b   : > { %v991_v34 = vmin.u32 %v862_v32, %v860_v29  ;;  %v754_v37 = vshrl.u32 %v753_v35, 30  ;;  %v890_v22 = vand.u32 3, %v889_v19 }
 0x11d   : > { %v864_v36 = vclz %v991_v34  ;;  %v755_v39 = vshll.u32 %v754_v37, 30  ;;  %v778_v49 = vsub.s32 4, %v754_v37  ;;  %vm895_vm3 = vcmp.eq.s32.totalorder %v890_v22, 2 }
 0x11e   : > { %vm892_vm4 = vcmp.eq.s32.totalorder %v890_v22, 0  ;;  %vm891_vm5 = vcmp.lt.s32.totalorder %v890_v22, 2 }
 0x11f   : > { %v992_v38 = vadd.s32 4294967294, %v864_v36  ;;  %v756_v41 = vsub.s32 %v752_v33, %v755_v39  ;;  %v779_v23 = vsel %vm694_vm1, %v778_v49, %v754_v37 }
 0x120   : > { %v781_v26 = vsel %vm1339_vm2, 0, %v779_v23 }
 0x121   : > { %vm993_vm13 = vcmp.lt.s32.totalorder %v992_v38, 0  ;;  %v758_v45 = vsub.s32 0, %v756_v41 }
 0x122   : > { %v867_v42 = vsel %vm993_vm13, 0, %v992_v38 }
 0x123   : > { %v868_v44 = vsub.s32 32, %v867_v42  ;;  %v872_v40 = vsub.s32 4294967266, %v867_v42  ;;  %v869_v50 = vshll.u32 %v860_v29, %v867_v42  ;;  %v987_v54 = vmin.u32 %v758_v45, %v756_v41 }
 0x124   : > { %v785_v29 = vadd.s32 3, %v781_v26 }
 0x125   : > { %v870_v51 = vshrl.u32 %v852_v43, %v868_v44  ;;  %v873_v53 = vadd.s32 127, %v872_v40  ;;  %v760_v58 = vclz %v987_v54 }
 0x126   : > { %v786_v33 = vand.u32 3, %v785_v29 }
 0x127   : > { %v871_v55 = vor.u32 %v870_v51, %v869_v50  ;;  %v874_v56 = vshll.u32 %v873_v53, 23  ;;  %v988_v60 = vadd.s32 4294967294, %v760_v58 }
 0x128   : > { %vm791_vm7 = vcmp.eq.s32.totalorder %v786_v33, 2  ;;  %vm788_vm8 = vcmp.eq.s32.totalorder %v786_v33, 0  ;;  %vm787_vm9 = vcmp.lt.s32.totalorder %v786_v33, 2 }
 0x129   : > { %v875_v59 = vor.u32 4788187, %v874_v56  ;;  %v878_v62 = vcvt.s32.f32 %v871_v55  ;;  %vm989_vm14 = vcmp.lt.s32.totalorder %v988_v60, 0 }
 0x12a   : > { %v763_v63 = vsel %vm989_vm14, 0, %v988_v60 }
 0x12b   : > { %v876_v61 = vand.u32 2147483647, %v875_v59  ;;  %v764_v46 = vsub.s32 32, %v763_v63  ;;  %v768_v48 = vsub.s32 4294967266, %v763_v63  ;;  %v765_v4 = vshll.u32 %v756_v41, %v763_v63 }
 0x12d   : > { %v879_v0 = vmul.f32 %v878_v62, %v876_v61  ;;  %v766_v6 = vshrl.u32 %v748_v1, %v764_v46  ;;  %v769_v7 = vadd.s32 127, %v768_v48 }
 0x12f   : > { %v880_v2 = vxor.u32 2147483648, %v879_v0  ;;  %v767_v10 = vor.u32 %v766_v6, %v765_v4  ;;  %v770_v11 = vshll.u32 %v769_v7, 23 }
 0x131   : > { %v881_v9 = vsel %vm798_vm15, %v880_v2, %v879_v0  ;;  %v771_v13 = vor.u32 4788187, %v770_v11  ;;  %v774_v15 = vcvt.s32.f32 %v767_v10 }
 0x132   : > { %v884_v12 = vsel %vm797_vm0, %v1281_v47, %v881_v9 }
 0x133   : > { %1121 = vcosq.f32 %v884_v12  ;;  %v772_v14 = vand.u32 2147483647, %v771_v13 }
 0x134   : > { %1123 = vsinq.f32 %v884_v12 }
 0x135   : > { %v775_v17 = vmul.f32 %v774_v15, %v772_v14 }
 0x137   : > { %v776_v18 = vxor.u32 2147483648, %v775_v17 }
 0x139   : > { %v777_v20 = vsel %vm694_vm1, %v776_v18, %v775_v17 }
 0x13a   : > { %v780_v21 = vsel %vm1339_vm2, %v1285_v52, %v777_v20 }
 0x13b   : > { %1125 = vcosq.f32 %v780_v21 }
 0x13c   : > { %1127 = vsinq.f32 %v780_v21 }
 0x140   : > { %v1122_v24 = vpop.eup %1121 }
 0x141   : > { %v1124_v25 = vpop.eup %1123  ;;  %v896_v57 = vxor.u32 2147483648, %v1122_v24 }
 0x142   : > { %v893_v27 = vxor.u32 2147483648, %v1124_v25 }
 0x143   : > { %v897_v28 = vsel %vm895_vm3, %v896_v57, %v1124_v25 }
 0x144   : > { %v894_v30 = vsel %vm892_vm4, %v1122_v24, %v893_v27 }
 0x145   : > { %v898_v31 = vsel %vm891_vm5, %v894_v30, %v897_v28 }
 0x146   : > { %v899_v32 = vsel %vm888_vm6, nan, %v898_v31 }
 0x147   : > { %901 = vst [vmem:[%s164_s10 + $0x8] sm:$0xff] %v899_v32 }
 0x148   : > { %v1126_v34 = vpop.eup %1125 }
 0x149   : > { %v1128_v35 = vpop.eup %1127  ;;  %v792_v36 = vxor.u32 2147483648, %v1126_v34 }
 0x14a   : > { %v789_v37 = vxor.u32 2147483648, %v1128_v35 }
 0x14b   : > { %v793_v38 = vsel %vm791_vm7, %v792_v36, %v1128_v35 }
 0x14c   : > { %v790_v39 = vsel %vm788_vm8, %v1126_v34, %v789_v37 }
 0x14d   : > { %v794_v47 = vsel %vm787_vm9, %v790_v39, %v793_v38 }
 0x14e   : > { %v795_v41 = vsel %vm784_vm10, nan, %v794_v47 }
 0x14f   : > { %900 = vst [vmem:[%s164_s10] sm:$0xff] %v795_v41 }
 0x150   : > { %1142 = shalt.err (!%p1139_p3)
}
 0x151   : > { %s1143_s29 = scalar_lea.hbm %s1356_s24, 256  ;;  %s1147_s5 = scalar_lea.hbm %s1406_s3, 1024 }
 0x152   : > { %p1144_p4 = scmp.ne.s32.totalorder %s1356_s24, %s1143_s29  ;;  %p1148_p9 = scmp.lt.s32.totalorder %s1356_s24, %s1406_s3 }
 0x153   : > { %p1149_p10 = scmp.lt.s32.totalorder %s1147_s5, %s1143_s29 }
 0x154   : > { %p1145_p7 = pnand %p1144_p4, %p1258_p5 }
 0x155   : > { %p1150_p11 = por %p1149_p10, %p1148_p9 }
 0x156   : > { %p1146_p8 = pneg %p1145_p7 }
 0x158   : > { %p1151_p12 = pnand %p1150_p11, %p1146_p8 }
 0x15a   : > { %1154 = shalt.err (!%p1151_p12)
}
 0x15b   : > { %s1198_s8 = smov 128   ;;  %s1199_s9 = smov 8  }
 0x15c   : > { %1074 = dma.vmem_to_hbm [thread:$0]  (%p1258_p5), %s1358_s17, 256, %s1356_s24, %s1363_s16, %s1198_s8, %s1198_s8, %s1199_s9  }
 0x15d PF: > { %p1080_p13 = scmp.ge.s32.totalorder %s1189_s15, 2  ;;  %s931_s10 = sand.u32 1, %s1177_s12  }
 0x15e   : > { %s932_s11 = scalar_lea.sflag [#allocation3], %s931_s10 }
 0x15f   : > { %p1077_p0 = pnand %p1080_p13, %p1262_p6 }
 0x161   : > { %p1078_p1 = pneg %p1077_p0 }
 0x163   : > { %1172 = dma.done.wait (%p1078_p1), %s932_s11, 256  }
 0x164   : > { %1174 = vsyncadd (%p1078_p1), %s932_s11, 4294967040  ;;  %p13_p2 = scmp.ge.s32.totalorder %s1245_s18, 6   ;;  %s1411_s12 = smov %s1181_s13 }
 0x165   : > { %s1412_s13 = smov %s1185_s14  ;;  %s1413_s14 = smov %s1256_s21 }
 0x166   : > { %s1414_s15 = smov %s1245_s18  ;;  %15 = sbr.rel (!%p13_p2) target bundleno = 3 (0x3), region = 67 }
 0x16b   :  { %937 = vsyncpa [#allocation3], 1 }
 0x16c   :  { %939 = vsyncpa [#allocation3 + $0x1], 1 }

</bundles_post_ra>
